<compile_context>
chip_gen: v5e
topology: v5e:2x2
jax: 0.10.0
libtpu: 0.0.40
codegen_flags: <defaults>
</compile_context>

<pallas_src>
import functools

import jax
import jax.numpy as jnp
from jax.experimental import pallas as pl
from jax.experimental.pallas import tpu as pltpu


def _round_up(n: int, m: int) -> int:
    return ((n + m - 1) // m) * m


def policy_mlp_kernel(x_ref, p1_ref, p2_ref, o_ref):
    """One batch tile of the MLP, batch-on-lanes layout.

    x_ref : (4, TB)  input features, batch on lanes
    p1_ref: (32, 5)  [w1 | b1]
    p2_ref: (1, 33)  [w2[1]-w2[0] | b2[1]-b2[0]]
    o_ref : (2, TB)  softmax probabilities (row 0 = class 0, row 1 = class 1)
    """
    x = x_ref[...]                      # (4, TB)
    p1 = p1_ref[...]                    # (32, 5)
    p2 = p2_ref[...]                    # (1, 33)

    # ---- layer 1 on the VPU: K=4 is far too small for the MXU; 4 broadcast-FMAs + bias.
    h = p1[:, 4:5] + p1[:, 0:1] * x[0:1, :]
    h = h + p1[:, 1:2] * x[1:2, :]
    h = h + p1[:, 2:3] * x[2:3, :]
    h = h + p1[:, 3:4] * x[3:4, :]
    h = jnp.maximum(h, 0.0)             # ReLU -> (32, TB)

    # ---- layer 2: for a 2-class softmax only d = logit1 - logit0 matters (K=32 on MXU).
    d = jnp.dot(p2[:, :32], h, preferred_element_type=jnp.float32)   # (1, TB)
    d = d + p2[:, 32:33]

    # elementwise 2-class softmax (sigmoid form) — VPU + EUP, no XLU reductions
    p_one = 1.0 / (1.0 + jnp.exp(-d))   # (1, TB), f32
    o_ref[0:1, :] = 1.0 - p_one
    o_ref[1:2, :] = p_one


def pack_params(w1, b1, w2, b2):
    """Pack PyTorch-layout params into the two kernel operands (do once at init)."""
    p1 = jnp.concatenate([w1, b1[:, None]], axis=1).astype(jnp.float32)        # (32, 5)
    p2 = jnp.concatenate(
        [w2[1:2, :] - w2[0:1, :], (b2[1] - b2[0]).reshape(1, 1)], axis=1
    ).astype(jnp.float32)                                                      # (1, 33)
    return p1, p2


@functools.partial(jax.jit, static_argnames=("tb",))
def policy_network_forward_packed(x, p1, p2, tb: int = 512):
    """x: (B, 4) f32 -> probabilities (B, 2). Params already packed via pack_params."""
    B = x.shape[0]
    tb = min(tb, _round_up(B, 128))          # lane tile, multiple of 128
    b_pad = _round_up(B, tb)

    # lane-dense layout: batch on the lane dim, zero-padded up to a multiple of tb
    xt = jnp.zeros((4, b_pad), jnp.float32).at[:, :B].set(x.T.astype(jnp.float32))

    out_t = pl.pallas_call(
        policy_mlp_kernel,
        out_shape=jax.ShapeDtypeStruct((2, b_pad), jnp.float32),
        grid=(b_pad // tb,),
        in_specs=[
            pl.BlockSpec((4, tb), lambda i: (0, i)),    # batch tile of inputs
            pl.BlockSpec((32, 5), lambda i: (0, 0)),    # packed layer-1 params (resident)
            pl.BlockSpec((1, 33), lambda i: (0, 0)),    # packed layer-2 params (resident)
        ],
        out_specs=pl.BlockSpec((2, tb), lambda i: (0, i)),
        compiler_params=pltpu.CompilerParams(
            dimension_semantics=("parallel",),          # megacore-shard the batch axis
            vmem_limit_bytes=32 * 1024 * 1024,          # tiny footprint; safe on v5e/v6e/v7x
        ),
    )(xt, p1, p2)

    return out_t[:, :B].T                    # back to PyTorch (B, 2) layout


def policy_network_forward(x, w1, b1, w2, b2, tb: int = 512):
    """Convenience wrapper taking raw PyTorch-layout params (packs them per call)."""
    p1, p2 = pack_params(w1, b1, w2, b2)
    return policy_network_forward_packed(x, p1, p2, tb=tb)


def init_params(key):
    """Deterministic init mimicking PyTorch Linear defaults: U(-1/sqrt(fan_in), +)."""
    k1, k2, k3, k4 = jax.random.split(key, 4)
    bound1 = 1.0 / jnp.sqrt(4.0)
    bound2 = 1.0 / jnp.sqrt(32.0)
    w1 = jax.random.uniform(k1, (32, 4), jnp.float32, -bound1, bound1)
    b1 = jax.random.uniform(k2, (32,), jnp.float32, -bound1, bound1)
    w2 = jax.random.uniform(k3, (2, 32), jnp.float32, -bound2, bound2)
    b2 = jax.random.uniform(k4, (2,), jnp.float32, -bound2, bound2)
    return w1, b1, w2, b2


if __name__ == "__main__":
    key = jax.random.PRNGKey(0)
    k_params, k_x1, k_x2 = jax.random.split(key, 3)
    w1, b1, w2, b2 = init_params(k_params)

    # pack params once (hoisted out of the per-call hot path)
    p1, p2 = pack_params(w1, b1, w2, b2)

    def ref_forward(x):
        return jax.nn.softmax(jnp.maximum(x @ w1.T + b1, 0.0) @ w2.T + b2, axis=-1)

    # small demo batch (B=8) and a larger ragged batch (B=1000) to exercise the
    # batch grid (2 tiles of 512) and the tail padding path.
    for B, kx in ((8, k_x1), (1000, k_x2)):
        x = jax.random.normal(kx, (B, 4), jnp.float32)
        out = jax.block_until_ready(policy_network_forward_packed(x, p1, p2))
        ref = ref_forward(x)
        assert out.shape == (B, 2)
        assert jnp.allclose(out, ref, atol=1e-5), f"mismatch vs reference at B={B}"
        assert jnp.allclose(jnp.sum(out, axis=-1), 1.0, atol=1e-5)

    print("KERNEL_OK")
</pallas_src>

<mosaic_0001>
module attributes {stable_mosaic.version = 11 : i64} {
  func.func @policy_mlp_kernel(%arg0: i32, %arg1: memref<4x128xf32, #tpu.memory_space<vmem>>, %arg2: memref<32x5xf32, #tpu.memory_space<vmem>>, %arg3: memref<1x33xf32, #tpu.memory_space<vmem>>, %arg4: memref<2x128xf32, #tpu.memory_space<vmem>>) attributes {dimension_semantics = [#tpu.dimension_semantics<parallel>], iteration_bounds = array<i64: 1>, scalar_prefetch = 0 : i64, scratch_operands = 0 : i64, tpu.core_type = #tpu.core_type<tc>, window_params = [{transform_indices = @transform_0, window_bounds = array<i64: 4, 128>}, {pipeline_mode = #tpu.pipeline_mode<synchronous>, transform_indices = @transform_1, window_bounds = array<i64: 32, 5>}, {pipeline_mode = #tpu.pipeline_mode<synchronous>, transform_indices = @transform_2, window_bounds = array<i64: 1, 33>}, {transform_indices = @transform_3, window_bounds = array<i64: 2, 128>}]} {
    %c0 = arith.constant 0 : index
    %c0_0 = arith.constant 0 : index
    %0 = vector.load %arg1[%c0, %c0_0] : memref<4x128xf32, #tpu.memory_space<vmem>>, vector<4x128xf32>
    %c0_1 = arith.constant 0 : index
    %c0_2 = arith.constant 0 : index
    %1 = vector.load %arg2[%c0_1, %c0_2] : memref<32x5xf32, #tpu.memory_space<vmem>>, vector<32x5xf32>
    %c0_3 = arith.constant 0 : index
    %c0_4 = arith.constant 0 : index
    %2 = vector.load %arg3[%c0_3, %c0_4] : memref<1x33xf32, #tpu.memory_space<vmem>>, vector<1x33xf32>
    %3 = vector.extract_strided_slice %1 {offsets = [0, 4], sizes = [32, 1], strides = [1, 1]} : vector<32x5xf32> to vector<32x1xf32>
    %4 = vector.extract_strided_slice %1 {offsets = [0, 0], sizes = [32, 1], strides = [1, 1]} : vector<32x5xf32> to vector<32x1xf32>
    %5 = vector.extract_strided_slice %0 {offsets = [0, 0], sizes = [1, 128], strides = [1, 1]} : vector<4x128xf32> to vector<1x128xf32>
    %6 = vector.broadcast %4 : vector<32x1xf32> to vector<32x128xf32>
    %7 = vector.broadcast %5 : vector<1x128xf32> to vector<32x128xf32>
    %8 = arith.mulf %6, %7 : vector<32x128xf32>
    %9 = vector.broadcast %3 : vector<32x1xf32> to vector<32x128xf32>
    %10 = arith.addf %9, %8 : vector<32x128xf32>
    %11 = vector.extract_strided_slice %1 {offsets = [0, 1], sizes = [32, 1], strides = [1, 1]} : vector<32x5xf32> to vector<32x1xf32>
    %12 = vector.extract_strided_slice %0 {offsets = [1, 0], sizes = [1, 128], strides = [1, 1]} : vector<4x128xf32> to vector<1x128xf32>
    %13 = vector.broadcast %11 : vector<32x1xf32> to vector<32x128xf32>
    %14 = vector.broadcast %12 : vector<1x128xf32> to vector<32x128xf32>
    %15 = arith.mulf %13, %14 : vector<32x128xf32>
    %16 = arith.addf %10, %15 : vector<32x128xf32>
    %17 = vector.extract_strided_slice %1 {offsets = [0, 2], sizes = [32, 1], strides = [1, 1]} : vector<32x5xf32> to vector<32x1xf32>
    %18 = vector.extract_strided_slice %0 {offsets = [2, 0], sizes = [1, 128], strides = [1, 1]} : vector<4x128xf32> to vector<1x128xf32>
    %19 = vector.broadcast %17 : vector<32x1xf32> to vector<32x128xf32>
    %20 = vector.broadcast %18 : vector<1x128xf32> to vector<32x128xf32>
    %21 = arith.mulf %19, %20 : vector<32x128xf32>
    %22 = arith.addf %16, %21 : vector<32x128xf32>
    %23 = vector.extract_strided_slice %1 {offsets = [0, 3], sizes = [32, 1], strides = [1, 1]} : vector<32x5xf32> to vector<32x1xf32>
    %24 = vector.extract_strided_slice %0 {offsets = [3, 0], sizes = [1, 128], strides = [1, 1]} : vector<4x128xf32> to vector<1x128xf32>
    %25 = vector.broadcast %23 : vector<32x1xf32> to vector<32x128xf32>
    %26 = vector.broadcast %24 : vector<1x128xf32> to vector<32x128xf32>
    %27 = arith.mulf %25, %26 : vector<32x128xf32>
    %28 = arith.addf %22, %27 : vector<32x128xf32>
    %cst = arith.constant 0.000000e+00 : f32
    %29 = vector.broadcast %cst : f32 to vector<32x128xf32>
    %30 = arith.maximumf %28, %29 : vector<32x128xf32>
    %31 = vector.extract_strided_slice %2 {offsets = [0, 0], sizes = [1, 32], strides = [1, 1]} : vector<1x33xf32> to vector<1x32xf32>
    %cst_5 = arith.constant dense<0.000000e+00> : vector<1x128xf32>
    %32 = tpu.matmul %31, %30, %cst_5 {dimension_numbers = #tpu.dot_dimension_numbers<[1], [0], [0], [1], [0, 0, 1, 1], [], []>} : vector<1x32xf32>, vector<32x128xf32>, vector<1x128xf32> -> vector<1x128xf32>
    %33 = vector.extract_strided_slice %2 {offsets = [0, 32], sizes = [1, 1], strides = [1, 1]} : vector<1x33xf32> to vector<1x1xf32>
    %34 = vector.broadcast %33 : vector<1x1xf32> to vector<1x128xf32>
    %35 = arith.addf %32, %34 : vector<1x128xf32>
    %cst_6 = arith.constant 0.000000e+00 : f32
    %36 = vector.broadcast %cst_6 : f32 to vector<1x128xf32>
    %37 = arith.subf %36, %35 : vector<1x128xf32>
    %38 = math.exp %37 : vector<1x128xf32>
    %cst_7 = arith.constant 1.000000e+00 : f32
    %39 = vector.broadcast %cst_7 : f32 to vector<1x128xf32>
    %40 = arith.addf %39, %38 : vector<1x128xf32>
    %cst_8 = arith.constant 1.000000e+00 : f32
    %41 = vector.broadcast %cst_8 : f32 to vector<1x128xf32>
    %42 = arith.divf %41, %40 : vector<1x128xf32>
    %cst_9 = arith.constant 1.000000e+00 : f32
    %43 = vector.broadcast %cst_9 : f32 to vector<1x128xf32>
    %44 = arith.subf %43, %42 : vector<1x128xf32>
    %c0_10 = arith.constant 0 : index
    %c0_11 = arith.constant 0 : index
    %45 = vector.load %arg4[%c0_10, %c0_11] : memref<2x128xf32, #tpu.memory_space<vmem>>, vector<1x128xf32>
    tpu.vector_store %arg4[%c0_10, %c0_11], %44 {strides = array<i32>} : memref<2x128xf32, #tpu.memory_space<vmem>>, vector<1x128xf32>,
    %c1 = arith.constant 1 : index
    %c0_12 = arith.constant 0 : index
    %46 = vector.load %arg4[%c1, %c0_12] : memref<2x128xf32, #tpu.memory_space<vmem>>, vector<1x128xf32>
    tpu.vector_store %arg4[%c1, %c0_12], %42 {strides = array<i32>} : memref<2x128xf32, #tpu.memory_space<vmem>>, vector<1x128xf32>,
    return
  }
  func.func @transform_0(%arg0: i32) -> (i32, i32) {
    %c0_i32 = arith.constant 0 : i32
    %c0_i32_0 = arith.constant 0 : i32
    return %c0_i32, %arg0 : i32, i32
  }
  func.func @transform_1(%arg0: i32) -> (i32, i32) {
    %c0_i32 = arith.constant 0 : i32
    %c0_i32_0 = arith.constant 0 : i32
    %c0_i32_1 = arith.constant 0 : i32
    return %c0_i32, %c0_i32_0 : i32, i32
  }
  func.func @transform_2(%arg0: i32) -> (i32, i32) {
    %c0_i32 = arith.constant 0 : i32
    %c0_i32_0 = arith.constant 0 : i32
    %c0_i32_1 = arith.constant 0 : i32
    return %c0_i32, %c0_i32_0 : i32, i32
  }
  func.func @transform_3(%arg0: i32) -> (i32, i32) {
    %c0_i32 = arith.constant 0 : i32
    %c0_i32_0 = arith.constant 0 : i32
    return %c0_i32, %arg0 : i32, i32
  }
}

</mosaic_0001>

<bundles_post_ra>
// kernel: policy_network_forward_packed.1
= control target key start
LH: loop header
LB: loop body
LE: loop exit
PB: predicated region body
PF: predicated region fallthrough
CT: control target
= control target key end

     0   :  { %v231_v0 = vmov 4   ;;  %v232_v1 = vmov 0   ;;  %v233_v5 = vmov 1   ;;  %v234_v6 = vmov 2   ;;  %s281_s1 = inlined_call_operand.vmem [shape: f32[32,5], index: 1, kind: input, shape index: {}]   ;;  %s282_s0 = inlined_call_operand.vmem [shape: f32[4,128], index: 0, kind: input, shape index: {}]   ;;  %s283_s2 = inlined_call_operand.vmem [shape: f32[1,33], index: 2, kind: input, shape index: {}]   ;;  %s284_s3 = inlined_call_operand.vmem [shape: f32[2,128], index: 3, kind: output, shape index: {}]  }
   0x1   :  { %207 = vset.pattern.permute.xlu1 %v231_v0  ;;  %206 = vset.pattern.permute.xlu0 %v232_v1  ;;  %v18_v2 = vld [vmem:[%s281_s1 + $0x18] sm:$0xff]  ;;  %v16_v3 = vld [vmem:[%s281_s1 + $0x8] sm:$0xff]  ;;  %v17_v4 = vld [vmem:[%s281_s1 + $0x10] sm:$0xff]  ;;  %v235_v8 = vmov 3   ;;  %v236_v55 = vmov 32   ;;  %vm150_vm0 = vcmask 261120  }
   0x2   :  { %209 = vset.pattern.permute.xlu2 %v232_v1  ;;  %58 = vperm.xlu1 %207, %v18_v2   ;;  %v15_v7 = vld [vmem:[%s281_s1] sm:$0xff] }
   0x3   :  { %37 = vperm.xlu0 %206, %v18_v2   ;;  %27 = vperm.xlu2 %209, %v16_v3   ;;  %v14_v20 = vld [vmem:[%s282_s0] sm:$0xf] }
   0x4   :  { %v40_v21 = vperm.slane %v14_v20, 0  ;;  %v81_v23 = vperm.slane %v14_v20, 1  ;;  %v106_v29 = vperm.slane %v14_v20, 2  ;;  %v131_v40 = vperm.slane %v14_v20, 3  ;;  %v19_v54 = vld [vmem:[%s283_s2] sm:$0x1] }
   0xa   :  { %208 = vset.pattern.permute.xlu1 %v233_v5 }
   0xb   :  { %32 = vperm.xlu0 %206, %v17_v4   ;;  %78 = vperm.xlu1 %208, %v18_v2  }
   0xc   :  { %210 = vset.pattern.permute.xlu2 %v231_v0 }
   0xd   :  { %54 = vperm.xlu2 %210, %v17_v4  }
  0x13   :  { %211 = vset.pattern.permute.xlu0 %v233_v5  ;;  %212 = vset.pattern.permute.xlu1 %v234_v6 }
  0x14   :  { %74 = vperm.xlu0 %211, %v17_v4   ;;  %103 = vperm.xlu1 %212, %v18_v2  }
  0x15   :  { %213 = vset.pattern.permute.xlu2 %v232_v1 }
  0x16   :  { %22 = vperm.xlu2 %213, %v15_v7  }
  0x1c   :  { %216 = vset.pattern.permute.xlu0 %v234_v6  ;;  %214 = vset.pattern.permute.xlu1 %v231_v0 }
  0x1d   :  { %99 = vperm.xlu0 %216, %v17_v4   ;;  %50 = vperm.xlu1 %214, %v16_v3  }
  0x1e   :  { %215 = vset.pattern.permute.xlu2 %v233_v5 }
  0x1f   :  { %70 = vperm.xlu2 %215, %v16_v3  }
  0x25   :  { %221 = vset.pattern.permute.xlu0 %v235_v8  ;;  %217 = vset.pattern.permute.xlu1 %v235_v8 }
  0x26   :  { %124 = vperm.xlu0 %221, %v17_v4   ;;  %128 = vperm.xlu1 %217, %v18_v2  }
  0x27   :  { %218 = vset.pattern.permute.xlu2 %v231_v0 }
  0x28   :  { %46 = vperm.xlu2 %218, %v15_v7  }
  0x2e   :  { %219 = vset.pattern.permute.xlu1 %v233_v5  ;;  %226 = vset.pattern.permute.xlu0 %v236_v55 }
  0x2f   :  { %66 = vperm.xlu1 %219, %v15_v7  }
  0x30   :  { %220 = vset.pattern.permute.xlu2 %v234_v6 }
  0x31   :  { %95 = vperm.xlu2 %220, %v16_v3  }
  0x37   :  { %222 = vset.pattern.permute.xlu1 %v234_v6 }
  0x38   :  { %91 = vperm.xlu1 %222, %v15_v7  }
  0x39   :  { %223 = vset.pattern.permute.xlu2 %v235_v8 }
  0x3a   :  { %120 = vperm.xlu2 %223, %v16_v3  }
  0x40   :  { %224 = vset.pattern.permute.xlu1 %v235_v8 }
  0x41   :  { %116 = vperm.xlu1 %224, %v15_v7  }
  0x42   :  { %225 = vset.pattern.permute.xlu2 %v236_v55 }
  0x43   :  { %146 = vperm.xlu2 %225, %v19_v54  }
  0x5d   :  { %v28_v9 = vpop.permute.xlu2 %27 }
  0x5e   :  { %v42_v25 = vmul.f32 %v40_v21, %v28_v9 }
  0x67   :  { %v55_v10 = vpop.permute.xlu2 %54 }
  0x70   :  { %v23_v11 = vpop.permute.xlu2 %22 }
  0x71   :  { %v41_v62 = vmul.f32 %v40_v21, %v23_v11 }
  0x74   :  { %v59_v12 = vpop.permute.xlu1 %58 }
  0x75   :  { %v38_v13 = vpop.permute.xlu0 %37 }
  0x76   :  { %v44_v28 = vmul.f32 %v40_v21, %v38_v13 }
  0x78   :  { %v64_v35 = vadd.f32 %v59_v12, %v44_v28 }
  0x79   :  { %v71_v14 = vpop.permute.xlu2 %70 }
  0x7a   :  { %v83_v30 = vmul.f32 %v81_v23, %v71_v14 }
  0x7d   :  { %v79_v15 = vpop.permute.xlu1 %78  ;;  %v33_v16 = vpop.permute.xlu0 %32 }
  0x7e   :  { %v43_v24 = vmul.f32 %v40_v21, %v33_v16  ;;  %v85_v32 = vmul.f32 %v81_v23, %v79_v15 }
  0x80   :  { %v63_v33 = vadd.f32 %v55_v10, %v43_v24  ;;  %v89_v41 = vadd.f32 %v85_v32, %v64_v35 }
  0x82   :  { %v47_v17 = vpop.permute.xlu2 %46 }
  0x83   :  { %v61_v0 = vadd.f32 %v47_v17, %v41_v62 }
  0x86   :  { %v75_v18 = vpop.permute.xlu0 %74  ;;  %v104_v19 = vpop.permute.xlu1 %103 }
  0x87   :  { %v84_v34 = vmul.f32 %v81_v23, %v75_v18  ;;  %v110_v36 = vmul.f32 %v106_v29, %v104_v19 }
  0x89   :  { %v88_v42 = vadd.f32 %v84_v34, %v63_v33  ;;  %v114_v47 = vadd.f32 %v110_v36, %v89_v41 }
  0x8b   :  { %v96_v22 = vpop.permute.xlu2 %95 }
  0x8c   :  { %v108_v38 = vmul.f32 %v106_v29, %v96_v22 }
  0x8f   :  { %v100_v26 = vpop.permute.xlu0 %99  ;;  %v51_v27 = vpop.permute.xlu1 %50 }
  0x90   :  { %v62_v31 = vadd.f32 %v51_v27, %v42_v25  ;;  %v109_v37 = vmul.f32 %v106_v29, %v100_v26 }
  0x92   :  { %v87_v39 = vadd.f32 %v83_v30, %v62_v31  ;;  %v113_v44 = vadd.f32 %v109_v37, %v88_v42 }
  0x94   :  { %v121_v43 = vpop.permute.xlu2 %120  ;;  %v112_v51 = vadd.f32 %v108_v38, %v87_v39 }
  0x95   :  { %v133_v48 = vmul.f32 %v131_v40, %v121_v43 }
  0x97   :  { %v137_v57 = vadd.f32 %v133_v48, %v112_v51 }
  0x98   :  { %v125_v45 = vpop.permute.xlu0 %124  ;;  %v129_v46 = vpop.permute.xlu1 %128 }
  0x99   :  { %v134_v49 = vmul.f32 %v131_v40, %v125_v45  ;;  %v135_v50 = vmul.f32 %v131_v40, %v129_v46  ;;  %v141_v60 = vmax.f32 %v137_v57, 0.0 }
  0x9b   :  { %v139_v52 = vadd.f32 %v135_v50, %v114_v47  ;;  %v138_v53 = vadd.f32 %v134_v49, %v113_v44 }
  0x9d   :  { %v143_v56 = vmax.f32 %v139_v52, 0.0  ;;  %v142_v58 = vmax.f32 %v138_v53, 0.0  ;;  %v147_v8 = vpop.permute.xlu2 %146 }
  0x9e   :  { %v149_v9 = vperm.slane %v147_v8, 0 }
  0x9f   :  { %165 = vmatpush.msra.mxu0 %v143_v56 }
  0xa1   :  { %v67_v59 = vpop.permute.xlu1 %66  ;;  %166 = vmatpush.msra.mxu0 %v142_v58 }
  0xa2   :  { %v82_v63 = vmul.f32 %v81_v23, %v67_v59 }
  0xa3   :  { %167 = vmatpush.msra.mxu0 %v141_v60 }
  0xa4   :  { %v86_v2 = vadd.f32 %v82_v63, %v61_v0 }
  0xaa   :  { %v92_v61 = vpop.permute.xlu1 %91 }
  0xab   :  { %v107_v1 = vmul.f32 %v106_v29, %v92_v61 }
  0xad   :  { %v111_v4 = vadd.f32 %v107_v1, %v86_v2 }
  0xb3   :  { %v117_v3 = vpop.permute.xlu1 %116 }
  0xb4   :  { %v132_v5 = vmul.f32 %v131_v40, %v117_v3 }
  0xb6   :  { %v136_v6 = vadd.f32 %v132_v5, %v111_v4 }
  0xb8   :  { %v140_v7 = vmax.f32 %v136_v6, 0.0 }
  0xba   :  { %168 = vmatpush.msra.mxu0 %v140_v7 }
  0xbb   :  { %199 = vmatmul.msk.f32.vlgmr.msra.gmra.mxu0 %vm150_vm0, %v19_v54 }
 0x138   :  { %v170_v10 = vpop.f32.mrf.mxu0 }
 0x139   :  { %v171_v12 = vadd.f32 %v170_v10, %v149_v9 }
 0x13b   :  { %v173_v13 = vsub.f32 0.0, %v171_v12 }
 0x13d   :  { %v174_v14 = vmul.f32 1.442695, %v173_v13 }
 0x13f   :  { %227 = vpow2.f32 %v174_v14 }
 0x145   :  { %v228_v11 = vpop.eup %227 }
 0x146   :  { %v176_v15 = vadd.f32 1.0, %v228_v11 }
 0x148   :  { %229 = vrcp.f32 %v176_v15  ;;  %v188_v19 = vand.u32 2147483648, %v176_v15  ;;  %v186_v21 = vand.u32 2147483647, %v176_v15  ;;  %vm182_vm2 = vweird.f32 %v176_v15 }
 0x14a   :  { %v189_v23 = vor.u32 1.1754944e-38, %v188_v19  ;;  %vm187_vm4 = vcmp.eq.f32.partialorder %v186_v21, 8.507059e+37 }
 0x14e   :  { %v230_v16 = vpop.eup %229 }
 0x14f   :  { %v178_v17 = vmul.f32 %v230_v16, %v176_v15  ;;  %vm183_vm1 = vweird.f32 %v230_v16 }
 0x150   :  { %vm184_vm3 = vmor %vm182_vm2, %vm183_vm1 }
 0x151   :  { %v179_v18 = vsub.f32 1.0, %v178_v17 }
 0x153   :  { %v180_v20 = vmul.f32 %v230_v16, %v179_v18 }
 0x155   :  { %v181_v22 = vadd.f32 %v230_v16, %v180_v20 }
 0x157   :  { %v185_v24 = vsel %vm184_vm3, %v230_v16, %v181_v22 }
 0x158   :  { %v190_v25 = vsel %vm187_vm4, %v189_v23, %v185_v24 }
 0x159   :  { %v192_v26 = vsub.f32 1.0, %v190_v25  ;;  %194 = vst [vmem:[%s284_s3 + $0x1] sm:$0x1] %v190_v25 }
 0x15b   :  { %193 = vst [vmem:[%s284_s3] sm:$0x1] %v192_v26 }

</bundles_post_ra>
